<compile_context>
chip_gen: v6e
topology: v6e:2x2x1
jax: 0.10.0
libtpu: 0.0.40
codegen_flags: <defaults>
</compile_context>

<pallas_src>
import functools

import jax
import jax.numpy as jnp
from jax import lax
from jax.experimental import pallas as pl
from jax.experimental.pallas import tpu as pltpu

FEATURE_DIM = 768     # fixed by the module (self.featureDim = 768)
CLS_NUM = 8           # config['clsNumber'] — small synthetic value
BATCH = 8
MAX_ROW_TILE = 512    # streaming tile for large batches (85%+ of HBM roofline)


def linear_kernel(x_ref, w_ref, b_ref, o_ref, *, compute_dtype):
    """One row-tile of the fused linear layer.

    x_ref:  (tm, 768)     embeddings tile (lane-dense, 768 = 6*128)
    w_ref:  (clsNum, 768) weight, native nn.Linear layout, VMEM-resident
    b_ref:  (1, clsNum)   bias, VMEM-resident
    o_ref:  (tm, clsNum)  output logits tile
    """
    x = x_ref[...]
    w = w_ref[...]
    if compute_dtype is not None:
        # Optional reduced-precision MXU operands (fewer MXU passes, half the
        # DMA bytes once batched); accumulation below remains f32.
        x = x.astype(compute_dtype)
        w = w.astype(compute_dtype)
    # Contract the 768-dim of x against the 768-dim of W (i.e. x @ W.T) on the
    # MXU, accumulating in f32.
    logits = lax.dot_general(
        x,
        w,
        dimension_numbers=(((1,), (1,)), ((), ())),
        preferred_element_type=jnp.float32,
    )
    o_ref[...] = (logits + b_ref[...].astype(jnp.float32)).astype(o_ref.dtype)


def linear_clsfier_forward(embeddings, weight, bias, *,
                           row_tile=MAX_ROW_TILE, compute_dtype=None):
    """embeddings: (B, 768), weight: (clsNum, 768), bias: (clsNum,)."""
    B, K = embeddings.shape
    N, K2 = weight.shape
    assert K == K2 == FEATURE_DIM
    assert bias.shape == (N,)

    b2d = bias.reshape(1, N)

    # Row tile: whole batch when it already fits a single block, otherwise
    # stream `row_tile`-row tiles down a 1-D grid.  (Blocks default to VMEM.)
    tm = B if B <= row_tile else row_tile
    grid = (pl.cdiv(B, tm),)

    itemsize = jnp.dtype(embeddings.dtype).itemsize
    cost = pl.CostEstimate(
        flops=2 * B * N * K,
        transcendentals=0,
        bytes_accessed=(B * K + N * K + N + B * N) * itemsize,
    )

    kernel = functools.partial(linear_kernel, compute_dtype=compute_dtype)

    return pl.pallas_call(
        kernel,
        out_shape=jax.ShapeDtypeStruct((B, N), embeddings.dtype),
        grid_spec=pltpu.PrefetchScalarGridSpec(
            num_scalar_prefetch=0,
            grid=grid,
            in_specs=[
                # Embeddings: one row tile per grid step.
                pl.BlockSpec((tm, K), lambda i: (i, 0)),
                # Weight: constant block index -> stays VMEM-resident across
                # all grid steps (never re-DMA'd).
                pl.BlockSpec((N, K), lambda i: (0, 0)),
                # Bias: same, VMEM-resident.
                pl.BlockSpec((1, N), lambda i: (0, 0)),
            ],
            out_specs=pl.BlockSpec((tm, N), lambda i: (i, 0)),
        ),
        compiler_params=pltpu.CompilerParams(
            # Batch tiles are independent: shard across v7x's 2 TensorCores,
            # no-op (but harmless) on single-TC v5e/v6e.
            dimension_semantics=("parallel",),
            # Well under the v7x 64 MiB physical VMEM; plenty for the
            # double-buffered 512x768 f32 tiles used here.
            vmem_limit_bytes=32 * 1024 * 1024,
        ),
        cost_estimate=cost,
    )(embeddings, weight, b2d)


if __name__ == "__main__":
    key = jax.random.PRNGKey(0)
    k_x, k_w, k_big = jax.random.split(key, 3)

    # Deterministic synthetic parameters (module: weight = initializeValue,
    # bias = zeros). Shapes match nn.Linear(768, clsNum).
    weight = jax.random.normal(k_w, (CLS_NUM, FEATURE_DIM), dtype=jnp.float32) * 0.02
    bias = jnp.zeros((CLS_NUM,), dtype=jnp.float32)

    # --- 1) Module-exact path: small batch, f32 operands ---------------------
    embeddings = jax.random.normal(k_x, (BATCH, FEATURE_DIM), dtype=jnp.float32)
    logits = linear_clsfier_forward(embeddings, weight, bias)
    jax.block_until_ready(logits)

    ref = embeddings @ weight.T + bias
    assert logits.shape == (BATCH, CLS_NUM)
    assert jnp.allclose(logits, ref, atol=1e-4, rtol=1e-4)

    # --- 2) Batched streaming path: 1-D grid (2 steps) + bf16 operands -------
    big_batch = 1024
    big_emb = jax.random.normal(k_big, (big_batch, FEATURE_DIM), dtype=jnp.float32)
    big_logits = linear_clsfier_forward(
        big_emb, weight, bias, compute_dtype=jnp.bfloat16)
    jax.block_until_ready(big_logits)

    big_ref = big_emb @ weight.T + bias
    assert big_logits.shape == (big_batch, CLS_NUM)
    # bf16 operands -> looser tolerance (f32 accumulation keeps it tight-ish).
    assert jnp.allclose(big_logits, big_ref, atol=5e-2, rtol=5e-2)

    print("KERNEL_OK")
</pallas_src>

<mosaic_0001>
module attributes {stable_mosaic.version = 11 : i64} {
  func.func @linear_kernel(%arg0: i32, %arg1: memref<8x768xf32, #tpu.memory_space<vmem>>, %arg2: memref<8x768xf32, #tpu.memory_space<vmem>>, %arg3: memref<1x8xf32, #tpu.memory_space<vmem>>, %arg4: memref<8x8xf32, #tpu.memory_space<vmem>>) attributes {dimension_semantics = [#tpu.dimension_semantics<parallel>], iteration_bounds = array<i64: 1>, scalar_prefetch = 0 : i64, scratch_operands = 0 : i64, tpu.core_type = #tpu.core_type<tc>, window_params = [{transform_indices = @transform_0, window_bounds = array<i64: 8, 768>}, {pipeline_mode = #tpu.pipeline_mode<synchronous>, transform_indices = @transform_1, window_bounds = array<i64: 8, 768>}, {pipeline_mode = #tpu.pipeline_mode<synchronous>, transform_indices = @transform_2, window_bounds = array<i64: 1, 8>}, {transform_indices = @transform_3, window_bounds = array<i64: 8, 8>}]} {
    %c0 = arith.constant 0 : index
    %c0_0 = arith.constant 0 : index
    %0 = vector.load %arg1[%c0, %c0_0] : memref<8x768xf32, #tpu.memory_space<vmem>>, vector<8x768xf32>
    %c0_1 = arith.constant 0 : index
    %c0_2 = arith.constant 0 : index
    %1 = vector.load %arg2[%c0_1, %c0_2] : memref<8x768xf32, #tpu.memory_space<vmem>>, vector<8x768xf32>
    %cst = arith.constant dense<0.000000e+00> : vector<8x8xf32>
    %2 = tpu.matmul %0, %1, %cst {dimension_numbers = #tpu.dot_dimension_numbers<[1], [1], [0], [0], [0, 0, 1, 0], [], []>} : vector<8x768xf32>, vector<8x768xf32>, vector<8x8xf32> -> vector<8x8xf32>
    %c0_3 = arith.constant 0 : index
    %c0_4 = arith.constant 0 : index
    %3 = vector.load %arg3[%c0_3, %c0_4] : memref<1x8xf32, #tpu.memory_space<vmem>>, vector<1x8xf32>
    %4 = vector.broadcast %3 : vector<1x8xf32> to vector<8x8xf32>
    %5 = arith.addf %2, %4 : vector<8x8xf32>
    %c0_5 = arith.constant 0 : index
    %c0_6 = arith.constant 0 : index
    %6 = vector.load %arg4[%c0_5, %c0_6] : memref<8x8xf32, #tpu.memory_space<vmem>>, vector<8x8xf32>
    tpu.vector_store %arg4[%c0_5, %c0_6], %5 {strides = array<i32>} : memref<8x8xf32, #tpu.memory_space<vmem>>, vector<8x8xf32>,
    return
  }
  func.func @transform_0(%arg0: i32) -> (i32, i32) {
    %c0_i32 = arith.constant 0 : i32
    %c0_i32_0 = arith.constant 0 : i32
    return %arg0, %c0_i32 : i32, i32
  }
  func.func @transform_1(%arg0: i32) -> (i32, i32) {
    %c0_i32 = arith.constant 0 : i32
    %c0_i32_0 = arith.constant 0 : i32
    %c0_i32_1 = arith.constant 0 : i32
    return %c0_i32, %c0_i32_0 : i32, i32
  }
  func.func @transform_2(%arg0: i32) -> (i32, i32) {
    %c0_i32 = arith.constant 0 : i32
    %c0_i32_0 = arith.constant 0 : i32
    %c0_i32_1 = arith.constant 0 : i32
    return %c0_i32, %c0_i32_0 : i32, i32
  }
  func.func @transform_3(%arg0: i32) -> (i32, i32) {
    %c0_i32 = arith.constant 0 : i32
    %c0_i32_0 = arith.constant 0 : i32
    return %arg0, %c0_i32 : i32, i32
  }
}

</mosaic_0001>

<bundles_post_ra>
// kernel: tpu_custom_call.1
= control target key start
LH: loop header
LB: loop body
LE: loop exit
PB: predicated region body
PF: predicated region fallthrough
CT: control target
= control target key end

     0   :  { %8 = vsyncpa [#allocation3], 0  ;;  %s391_s0 = inlined_call_operand.hbm [shape: f32[8,768], index: 0, kind: input, shape index: {}]   ;;  %s392_s1 = inlined_call_operand.hbm [shape: f32[8,768], index: 1, kind: input, shape index: {}]   ;;  %s393_s2 = inlined_call_operand.vmem [shape: f32[1,8], index: 2, kind: input, shape index: {}]   ;;  %s394_s3 = inlined_call_operand.hbm [shape: f32[8,8], index: 3, kind: output, shape index: {}]  }
   0x1   :  { %9 = vsyncpa [#allocation6], 0 }
   0x2   :  { %10 = vsyncpa [#allocation4], 0  ;;  %s356_s12 = smov [#allocation2]   ;;  %s357_s14 = smov [#allocation5]  }
   0x3   :  { %s17_s13 = sshll.u32 %s356_s12, 4  ;;  %s27_s15 = sshll.u32 %s357_s14, 4  ;;  %s18_s13 = int_to_ptr.vmem [resolvable:$true] %s17_s13  ;;  %s28_s15 = int_to_ptr.vmem [resolvable:$true] %s27_s15 }
   0x4   :  { %s298_s16 = scalar_lea.vmem %s18_s13, 768  ;;  %p303_p1 = scmp.lt.s32.totalorder %s18_s13, %s18_s13 }
   0x5   :  { %p299_p0 = scmp.ne.s32.totalorder %s18_s13, %s298_s16  ;;  %p304_p2 = scmp.lt.s32.totalorder %s298_s16, %s298_s16 }
   0x7   :  { %p305_p3 = por %p304_p2, %p303_p1 }
   0x9   :  { %p306_p4 = pnand %p305_p3, %p299_p0 }
   0xb   :  { %309 = shalt.err (!%p306_p4)
}
   0xc   :  { %20 = dma.hbm_to_vmem [thread:$0]  %s391_s0, 768, %s18_s13, [#allocation3]  }
   0xd   :  { %s318_s19 = scalar_lea.vmem %s28_s15, 768  ;;  %p323_p6 = scmp.lt.s32.totalorder %s28_s15, %s28_s15 }
   0xe   :  { %p319_p5 = scmp.ne.s32.totalorder %s28_s15, %s318_s19  ;;  %p324_p7 = scmp.lt.s32.totalorder %s318_s19, %s318_s19 }
  0x10   :  { %p325_p8 = por %p324_p7, %p323_p6 }
  0x12   :  { %p326_p9 = pnand %p325_p8, %p319_p5 }
  0x14   :  { %329 = shalt.err (!%p326_p9)
}
  0x15   :  { %30 = dma.hbm_to_vmem [thread:$0]  %s392_s1, 768, %s28_s15, [#allocation6]  }
  0x16   :  { %350 = dma.done.wait [#allocation3], 768  }
  0x17   :  { %351 = vsyncadd [#allocation3], 4294966528 }
  0x18   :  { %352 = dma.done.wait [#allocation6], 768  }
  0x19   :  { %353 = vsyncadd [#allocation6], 4294966528  ;;  %v46_v0 = vld [vmem:[#allocation5 + $0x8] sm:$0xff]  ;;  %v45_v1 = vld [vmem:[#allocation5] sm:$0xff]  ;;  %s358_s22 = smov [#allocation7]   ;;  %vm268_vm0 = vcmask 64512  }
  0x1a   :  { %v48_v2 = vld [vmem:[#allocation5 + $0x18] sm:$0xff]  ;;  %88 = vmatprep.subr.mxu0 %v46_v0  ;;  %v47_v3 = vld [vmem:[#allocation5 + $0x10] sm:$0xff]  ;;  %v42_v6 = vld [vmem:[#allocation2 + $0x18] sm:$0xff]  ;;  %s276_s23 = sshll.u32 %s358_s22, 4  ;;  %s277_s23 = int_to_ptr.vmem [resolvable:$true] %s276_s23 }
  0x1b   :  { %158 = vmatprep.subr.mxu1 %v48_v2  ;;  %v40_v4 = vld [vmem:[#allocation2 + $0x8] sm:$0xff]  ;;  %v39_v5 = vld [vmem:[#allocation2] sm:$0xff]  ;;  %89 = vmatpush1.xpose.msra.mxu0 %v45_v1  ;;  %v50_v7 = vld [vmem:[#allocation5 + $0x28] sm:$0xff]  ;;  %s330_s24 = scalar_lea.vmem %s277_s23, 128  ;;  %p335_p11 = scmp.lt.s32.totalorder %s277_s23, %s277_s23 }
  0x1c   :  { %159 = vmatpush1.xpose.msra.mxu1 %v47_v3  ;;  %v41_v8 = vld [vmem:[#allocation2 + $0x10] sm:$0xff]  ;;  %122 = vmatprep.mubr.f32.mxu0 %v40_v4  ;;  %v44_v10 = vld [vmem:[#allocation2 + $0x28] sm:$0xff]  ;;  %v43_v11 = vld [vmem:[#allocation2 + $0x20] sm:$0xff]  ;;  %p331_p10 = scmp.ne.s32.totalorder %s277_s23, %s330_s24  ;;  %p336_p12 = scmp.lt.s32.totalorder %s330_s24, %s330_s24 }
  0x1d   :  { %192 = vmatprep.mubr.f32.mxu1 %v42_v6  ;;  %v49_v9 = vld [vmem:[#allocation5 + $0x20] sm:$0xff]  ;;  %228 = vmatprep.subr.mxu0 %v50_v7  ;;  %v286_v12 = vld [vmem:[%s393_s2] ss:$0 sm:$0xff] }
  0x1e   :  { %123 = vmatmul.mubr.f32.vlgmr.msra.gmra.mxu0 %v39_v5  ;;  %p337_p13 = por %p336_p12, %p335_p11 }
  0x1f   :  { %193 = vmatmul.mubr.f32.vlgmr.msra.gmra.mxu1 %v41_v8  ;;  %229 = vmatpush1.xpose.msra.mxu0 %v49_v9 }
  0x20   :  { %262 = vmatprep.mubr.f32.mxu0 %v44_v10  ;;  %p338_p0 = pnand %p337_p13, %p331_p10 }
  0x22   :  { %263 = vmatmul.mubr.f32.vlgmr.msra.gmra.mxu0 %v43_v11 }
  0xde   :  { %v124_v13 = vpop.f32.mrf.mxu0 }
  0xdf   :  { %v194_v14 = vpop.f32.mrf.mxu1  ;;  %v125_v15 = vadd.f32 %v286_v12, %v124_v13 }
  0xe0   :  { %v126_v16 = vpop.f32.mrf.mxu0 }
  0xe1   :  { %v196_v17 = vpop.f32.mrf.mxu1  ;;  %v195_v18 = vadd.f32 %v194_v14, %v125_v15 }
  0xe2   :  { %v264_v19 = vpop.f32.mrf.mxu0 }
  0xe3   :  { %v265_v20 = vadd.f32 %v264_v19, %v195_v18 }
  0xe4   :  { %v266_v21 = vpop.f32.mrf.mxu0 }
  0xe5   :  { %269 = vst.msk [vmem:[#allocation7] sm:$0xff] %vm268_vm0, %v265_v20 }
  0xe6   :  { %341 = shalt.err (!%p338_p0)
}
  0xe7   :  { %279 = dma.vmem_to_hbm [thread:$0]  %s277_s23, 128, %s394_s3, [#allocation4]  }
  0xe8   :  { %354 = dma.done.wait [#allocation4], 128  }
  0xe9   :  { %355 = vsyncadd [#allocation4], 4294967168 }
  0xea   :  { %283 = vsyncpa [#allocation3], 1 }
  0xeb   :  { %284 = vsyncpa [#allocation6], 1 }
  0xec   :  { %285 = vsyncpa [#allocation4], 1 }

</bundles_post_ra>
